<compile_context>
chip_gen: v7x
topology: tpu7x:2x2x1
jax: 0.10.0
libtpu: 0.0.40
codegen_flags: <defaults>
</compile_context>

<pallas_src>
import jax
import jax.numpy as jnp
from jax.experimental import pallas as pl
from jax.experimental.pallas import tpu as pltpu

# ---- model dims (small synthetic config, matching the module) ---------------
ENC_H = 24                  # enc_hidden_dim  (bidirectional -> 2*ENC_H features)
DEC_H = 32                  # dec_hidden_dim
ATT_H = DEC_H               # attention hidden dim (nn.Linear(..., dec_hidden_dim))
ENC_F = 2 * ENC_H           # 48
BATCH = 4
SRC_LEN = 8

# ---- packed layouts ----------------------------------------------------------
LANES = 128
B_TILE = 8                  # batch rows per grid step (fills all 8 sublanes)
CONCAT_F = DEC_H + ENC_F    # 80  : [dec_hidden ; enc] feature width
ROW_BA = CONCAT_F           # 80  : bias row (multiplied by the ones column of x)
ROW_V = 88                  # 88  : v stashed in a zero row (x column 88 is always 0)
K_ROWS = LANES              # 128 : K dim of the single matmul == padded feature width


def _attention_kernel(act_ref, w_ref, out_ref):
    """act [B_TILE*(S+1), 128] (x rows then bias rows), w [128, 128], out [B_TILE, 128]."""
    f32 = jnp.float32
    n_rows, lanes = act_ref.shape
    b_tile = out_ref.shape[0]
    s = n_rows // b_tile - 1                      # source length (static)

    act = act_ref[...]                            # [B_TILE*(S+1), 128]
    w = w_ref[...]                                # [128, 128] (resident across grid)

    x = act[: b_tile * s, :]                      # [B_TILE*S, 128]  = [h ; enc ; 1 ; 0]
    bias = act[b_tile * s :, :s]                  # [B_TILE, S]      additive mask bias
    v = w[ROW_V : ROW_V + 1, :]                   # [1, 128]         zero past ATT_H

    # Single MXU push: proj[:, :ATT_H] = [h;enc] @ W_a + b_a ; padded columns stay 0.
    proj = jnp.dot(x, w, preferred_element_type=f32)          # [B_TILE*S, 128]
    energy = jnp.tanh(proj).reshape(b_tile, s, lanes)         # [B_TILE, S, 128]

    # score = v . energy (zero-padded v kills padded lanes), plus the mask bias.
    score = jnp.sum(energy * v[None, :, :], axis=-1) + bias   # [B_TILE, S]

    # Numerically-stable softmax over the source axis (exact reciprocal).
    m = jnp.max(score, axis=-1, keepdims=True)
    e = jnp.exp(score - m)
    inv = pl.reciprocal(jnp.sum(e, axis=-1, keepdims=True))
    a = e * inv                                               # [B_TILE, S]

    # Lane-dense output slab; columns >= S are zero and sliced off in the wrapper.
    out_ref[...] = jnp.concatenate([a, jnp.zeros((b_tile, lanes - s), f32)], axis=1)


def pack_attention_params(params):
    """Build the single [128, 128] lane-dense weight slab once (outside decode loops)."""
    f32 = jnp.float32
    wa = params["wa"].astype(f32)                 # [CONCAT_F, ATT_H]
    ba = params["ba"].astype(f32)                 # [ATT_H]
    v = params["v"].astype(f32)                   # [ATT_H]
    slab = jnp.zeros((K_ROWS, LANES), f32)
    slab = slab.at[:CONCAT_F, :ATT_H].set(wa)     # rows 0..79 : W_a
    slab = slab.at[ROW_BA, :ATT_H].set(ba)        # row 80     : b_a (ones column)
    slab = slab.at[ROW_V, :ATT_H].set(v)          # row 88     : v   (x col 88 is 0)
    return slab


@jax.jit
def attention_layer(packed_w, dec_hidden, encoder_outputs, mask):
    """dec_hidden [B, DEC_H], encoder_outputs [S, B, 2*ENC_H], mask [B, S] -> attn [B, S]."""
    S, B, F = encoder_outputs.shape
    Bp = ((B + B_TILE - 1) // B_TILE) * B_TILE
    nb = Bp // B_TILE
    f32 = jnp.float32

    # Layout plumbing on the XLA side (fused under jit): batch-major encoder feats,
    # additive f32 mask bias, batch padding to full sublanes.
    enc = jnp.transpose(encoder_outputs, (1, 0, 2)).astype(f32)            # [B, S, F]
    h = dec_hidden.astype(f32)                                             # [B, DEC_H]
    bias = jnp.where(mask == 0, jnp.float32(-1e10), jnp.float32(0.0))      # [B, S]
    if Bp != B:
        enc = jnp.pad(enc, ((0, Bp - B), (0, 0), (0, 0)))
        h = jnp.pad(h, ((0, Bp - B), (0, 0)))
        bias = jnp.pad(bias, ((0, Bp - B), (0, 0)), constant_values=-1e10)

    # Single lane-dense activation operand: [h ; enc ; 1 ; 0-pad] per (b, s) row.
    h_rep = jnp.broadcast_to(h[:, None, :], (Bp, S, h.shape[1]))
    ones = jnp.ones((Bp, S, 1), f32)
    x = jnp.concatenate([h_rep, enc, ones], axis=2)                        # [Bp,S,81]
    x = jnp.pad(x, ((0, 0), (0, 0), (0, LANES - x.shape[2])))              # [Bp,S,128]
    bias_rows = jnp.pad(bias, ((0, 0), (0, LANES - S)))                    # [Bp,128]

    # One activation slab per batch block: B_TILE*S x-rows, then B_TILE bias rows.
    x_blk = x.reshape(nb, B_TILE * S, LANES)
    b_blk = bias_rows.reshape(nb, B_TILE, LANES)
    act = jnp.concatenate([x_blk, b_blk], axis=1)
    act = act.reshape(nb * B_TILE * (S + 1), LANES)

    rows_per_block = B_TILE * (S + 1)
    out = pl.pallas_call(
        _attention_kernel,
        out_shape=jax.ShapeDtypeStruct((Bp, LANES), jnp.float32),
        grid=(nb,),
        in_specs=[
            pl.BlockSpec((rows_per_block, LANES), lambda b: (b, 0)),   # per-block acts
            pl.BlockSpec((K_ROWS, LANES), lambda b: (0, 0)),           # weights resident
        ],
        out_specs=pl.BlockSpec((B_TILE, LANES), lambda b: (b, 0)),
        compiler_params=pltpu.CompilerParams(dimension_semantics=("parallel",)),
    )(act, packed_w)
    return out[:B, :S]


def reference(params, dec_hidden, encoder_outputs, mask):
    """Pure-JAX reference mirroring the PyTorch forward."""
    enc = jnp.transpose(encoder_outputs, (1, 0, 2))                  # [B, S, F]
    B, S, _ = enc.shape
    h_rep = jnp.broadcast_to(dec_hidden[:, None, :], (B, S, DEC_H))
    x = jnp.concatenate([h_rep, enc], axis=2)                        # [B, S, DEC_H+F]
    energy = jnp.tanh(x @ params["wa"] + params["ba"])               # [B, S, ATT_H]
    score = jnp.einsum("bsa,a->bs", energy, params["v"])             # [B, S]
    score = jnp.where(mask == 0, -1e10, score)
    return jax.nn.softmax(score, axis=1)


def make_params(key):
    k1, k2, k3 = jax.random.split(key, 3)
    s = 0.1
    return {
        # nn.Linear(2*ENC_H + DEC_H -> ATT_H), stored transposed, dec-hidden rows first
        # (matches torch.cat((dec_hidden, encoder_outputs), dim=2)).
        "wa": s * jax.random.normal(k1, (DEC_H + ENC_F, ATT_H), jnp.float32),
        "ba": s * jax.random.normal(k2, (ATT_H,), jnp.float32),
        # nn.Parameter(torch.rand(dec_hidden_dim))
        "v": jax.random.uniform(k3, (ATT_H,), jnp.float32),
    }


if __name__ == "__main__":
    key = jax.random.PRNGKey(0)
    kp, k1, k2 = jax.random.split(key, 3)
    params = make_params(kp)
    packed_w = pack_attention_params(params)

    dec_hidden = jax.random.normal(k1, (BATCH, DEC_H), jnp.float32)
    encoder_outputs = jax.random.normal(k2, (SRC_LEN, BATCH, ENC_F), jnp.float32)
    lens = jnp.array([SRC_LEN, 5, 3, SRC_LEN], dtype=jnp.int32)
    mask = (jnp.arange(SRC_LEN)[None, :] < lens[:, None]).astype(jnp.int32)  # [B, S]

    attn = attention_layer(packed_w, dec_hidden, encoder_outputs, mask)
    jax.block_until_ready(attn)

    ref = reference(params, dec_hidden, encoder_outputs, mask)
    assert attn.shape == (BATCH, SRC_LEN)
    assert jnp.allclose(attn, ref, atol=1e-3, rtol=1e-3)
    # rows sum to 1 and masked positions are (numerically) zero
    assert jnp.allclose(jnp.sum(attn, axis=1), 1.0, atol=1e-3)
    assert jnp.all(jnp.where(mask == 0, attn, 0.0) < 1e-6)

    print("KERNEL_OK")
</pallas_src>

<mosaic_0001>
module attributes {stable_mosaic.version = 11 : i64} {
  func.func @_attention_kernel(%arg0: i32, %arg1: memref<72x128xf32, #tpu.memory_space<vmem>>, %arg2: memref<128x128xf32, #tpu.memory_space<vmem>>, %arg3: memref<8x128xf32, #tpu.memory_space<vmem>>) attributes {dimension_semantics = [#tpu.dimension_semantics<parallel>], iteration_bounds = array<i64: 1>, scalar_prefetch = 0 : i64, scratch_operands = 0 : i64, tpu.core_type = #tpu.core_type<tc>, window_params = [{transform_indices = @transform_0, window_bounds = array<i64: 72, 128>}, {pipeline_mode = #tpu.pipeline_mode<synchronous>, transform_indices = @transform_1, window_bounds = array<i64: 128, 128>}, {transform_indices = @transform_2, window_bounds = array<i64: 8, 128>}]} {
    %c0 = arith.constant 0 : index
    %c0_0 = arith.constant 0 : index
    %0 = vector.load %arg1[%c0, %c0_0] : memref<72x128xf32, #tpu.memory_space<vmem>>, vector<72x128xf32>
    %c0_1 = arith.constant 0 : index
    %c0_2 = arith.constant 0 : index
    %1 = vector.load %arg2[%c0_1, %c0_2] : memref<128x128xf32, #tpu.memory_space<vmem>>, vector<128x128xf32>
    %2 = vector.extract_strided_slice %0 {offsets = [0, 0], sizes = [64, 128], strides = [1, 1]} : vector<72x128xf32> to vector<64x128xf32>
    %3 = vector.extract_strided_slice %0 {offsets = [64, 0], sizes = [8, 8], strides = [1, 1]} : vector<72x128xf32> to vector<8x8xf32>
    %4 = vector.extract_strided_slice %1 {offsets = [88, 0], sizes = [1, 128], strides = [1, 1]} : vector<128x128xf32> to vector<1x128xf32>
    %cst = arith.constant dense<0.000000e+00> : vector<64x128xf32>
    %5 = tpu.matmul %2, %1, %cst {dimension_numbers = #tpu.dot_dimension_numbers<[1], [0], [0], [1], [0, 0, 1, 1], [], []>} : vector<64x128xf32>, vector<128x128xf32>, vector<64x128xf32> -> vector<64x128xf32>
    %6 = math.tanh %5 : vector<64x128xf32>
    %7 = vector.shape_cast %6 : vector<64x128xf32> to vector<8x8x128xf32>
    %8 = vector.shape_cast %4 : vector<1x128xf32> to vector<1x1x128xf32>
    %9 = vector.broadcast %8 : vector<1x1x128xf32> to vector<8x8x128xf32>
    %10 = arith.mulf %7, %9 : vector<8x8x128xf32>
    %cst_3 = arith.constant dense<0.000000e+00> : vector<8x8xf32>
    %11 = vector.multi_reduction <add>, %10, %cst_3 [2] : vector<8x8x128xf32> to vector<8x8xf32>
    %12 = arith.addf %11, %3 : vector<8x8xf32>
    %cst_4 = arith.constant dense<0xFF800000> : vector<8xf32>
    %13 = vector.multi_reduction <maximumf>, %12, %cst_4 [1] : vector<8x8xf32> to vector<8xf32>
    %14 = vector.shape_cast %13 : vector<8xf32> to vector<8x1xf32>
    %15 = vector.broadcast %14 : vector<8x1xf32> to vector<8x8xf32>
    %16 = arith.subf %12, %15 : vector<8x8xf32>
    %17 = math.exp %16 : vector<8x8xf32>
    %cst_5 = arith.constant dense<0.000000e+00> : vector<8xf32>
    %18 = vector.multi_reduction <add>, %17, %cst_5 [1] : vector<8x8xf32> to vector<8xf32>
    %19 = vector.shape_cast %18 : vector<8xf32> to vector<8x1xf32>
    %20 = tpu.reciprocal %19 : vector<8x1xf32> -> vector<8x1xf32>
    %21 = vector.broadcast %20 : vector<8x1xf32> to vector<8x8xf32>
    %22 = arith.mulf %17, %21 : vector<8x8xf32>
    %cst_6 = arith.constant 0.000000e+00 : f32
    %23 = vector.broadcast %cst_6 : f32 to vector<8x120xf32>
    %24 = tpu.concatenate %22, %23 in 1 : vector<8x8xf32>, vector<8x120xf32> -> vector<8x128xf32>
    %c0_7 = arith.constant 0 : index
    %c0_8 = arith.constant 0 : index
    %25 = vector.load %arg3[%c0_7, %c0_8] : memref<8x128xf32, #tpu.memory_space<vmem>>, vector<8x128xf32>
    tpu.vector_store %arg3[%c0_7, %c0_8], %24 {strides = array<i32>} : memref<8x128xf32, #tpu.memory_space<vmem>>, vector<8x128xf32>,
    return
  }
  func.func @transform_0(%arg0: i32) -> (i32, i32) {
    %c0_i32 = arith.constant 0 : i32
    %c0_i32_0 = arith.constant 0 : i32
    return %arg0, %c0_i32 : i32, i32
  }
  func.func @transform_1(%arg0: i32) -> (i32, i32) {
    %c0_i32 = arith.constant 0 : i32
    %c0_i32_0 = arith.constant 0 : i32
    %c0_i32_1 = arith.constant 0 : i32
    return %c0_i32, %c0_i32_0 : i32, i32
  }
  func.func @transform_2(%arg0: i32) -> (i32, i32) {
    %c0_i32 = arith.constant 0 : i32
    %c0_i32_0 = arith.constant 0 : i32
    return %arg0, %c0_i32 : i32, i32
  }
}

</mosaic_0001>

<bundles_post_ra>
// kernel: attention_layer.1
= control target key start
LH: loop header
LB: loop body
LE: loop exit
PB: predicated region body
PF: predicated region fallthrough
CT: control target
= control target key end

     0   :  { %v149_v0 = vlaneseq  ;;  %vm316_vm0 = vcmask 1041409   ;;  %vm318_vm1 = vcmask 1042434   ;;  %vm320_vm2 = vcmask 1043459   ;;  %s984_s1 = inlined_call_operand.vmem [shape: f32[128,128], index: 1, kind: input, shape index: {}]   ;;  %s985_s0 = inlined_call_operand.vmem [shape: f32[72,128], index: 0, kind: input, shape index: {}]   ;;  %s986_s2 = inlined_call_operand.vmem [shape: f32[8,128], index: 2, kind: output, shape index: {}]  }
   0x1   :  { %v20_v1 = vld [vmem:[%s984_s1] sm:$0xff]  ;;  %v21_v2 = vld [vmem:[%s984_s1 + $0x8] sm:$0xff]  ;;  %v22_v3 = vld [vmem:[%s984_s1 + $0x10] sm:$0xff]  ;;  %vm322_vm3 = vcmask 1044484   ;;  %vm324_vm4 = vcmask 1045509   ;;  %vm326_vm5 = vcmask 1046534  }
   0x2   :  { %v671_v4 = vpack.c.bf16 %v21_v2, %v20_v1  ;;  %v23_v5 = vld [vmem:[%s984_s1 + $0x18] sm:$0xff]  ;;  %v785_v6 = vshrl.u32 %v149_v0, 7  ;;  %v24_v8 = vld [vmem:[%s984_s1 + $0x20] sm:$0xff]  ;;  %v25_v9 = vld [vmem:[%s984_s1 + $0x28] sm:$0xff]  ;;  %vm328_vm6 = vcmask 1047559   ;;  %vm331_vm7 = vcmask 64512  }
   0x3   :  { %v675_v7 = vpack.c.bf16 %v23_v5, %v22_v3  ;;  %v679_v10 = vpack.c.bf16 %v25_v9, %v24_v8  ;;  %v11_v11 = vld [vmem:[%s985_s0] sm:$0xff]  ;;  %v26_v14 = vld [vmem:[%s984_s1 + $0x30] sm:$0xff]  ;;  %v27_v15 = vld [vmem:[%s984_s1 + $0x38] sm:$0xff] }
   0x4   :  { %672 = vmatprep.subr.bf16.mxu0 %v671_v4  ;;  %703 = vmatprep.subr.bf16.mxu1 %v671_v4  ;;  %v15_v12 = vld [vmem:[%s985_s0 + $0x20] sm:$0xff]  ;;  %v800_v13 = vsub.s32 1, %v785_v6  ;;  %v809_v16 = vsub.s32 0, %v785_v6  ;;  %v812_v17 = vsub.s32 2, %v785_v6  ;;  %v683_v19 = vpack.c.bf16 %v27_v15, %v26_v14  ;;  %v29_v22 = vld [vmem:[%s984_s1 + $0x48] sm:$0xff]  ;;  %v30_v28 = vld [vmem:[%s984_s1 + $0x50] sm:$0xff] }
   0x5   :  { %674 = vmatpush3.bf16.msra.mxu0 %v671_v4  ;;  %711 = vmatpush3.bf16.msra.mxu1 %v671_v4  ;;  %v817_v18 = vld [vmem:[%s985_s0 + $0x40] sm:$0xff]  ;;  %v830_v24 = vsub.s32 4, %v785_v6  ;;  %v835_v26 = vsub.s32 3, %v785_v6  ;;  %v31_v29 = vld [vmem:[%s984_s1 + $0x58] sm:$0xff]  ;;  %v848_v32 = vsub.s32 5, %v785_v6  ;;  %v33_v35 = vld [vmem:[%s984_s1 + $0x68] sm:$0xff] }
   0x6   :  { %676 = vmatprep.subr.bf16.mxu0 %v675_v7  ;;  %704 = vmatprep.subr.bf16.mxu1 %v675_v7  ;;  %v188_v20 = vrot.slane %v817_v18, %v800_v13  ;;  %v28_v21 = vld [vmem:[%s984_s1 + $0x40] sm:$0xff]  ;;  %v181_v23 = vrot.slane %v817_v18, %v809_v16  ;;  %v195_v25 = vrot.slane %v817_v18, %v812_v17  ;;  %v34_v38 = vld [vmem:[%s984_s1 + $0x70] sm:$0xff]  ;;  %v35_v39 = vld [vmem:[%s984_s1 + $0x78] sm:$0xff] }
   0x7   :  { %659 = vmatprep.mubr.f32.mxu0 %v11_v11  ;;  %665 = vmatprep.mubr.f32.mxu1 %v15_v12  ;;  %v687_v27 = vpack.c.bf16 %v29_v22, %v28_v21  ;;  %v209_v30 = vrot.slane %v817_v18, %v830_v24  ;;  %v202_v31 = vrot.slane %v817_v18, %v835_v26  ;;  %v32_v34 = vld [vmem:[%s984_s1 + $0x60] sm:$0xff]  ;;  %v12_v41 = vld [vmem:[%s985_s0 + $0x8] sm:$0xff]  ;;  %v13_v43 = vld [vmem:[%s985_s0 + $0x10] sm:$0xff]  ;;  %v884_v11 = vsub.s32 7, %v785_v6 }
   0x8   :  { %190 = vbcast.lane.b32.xlu1 %v188_v20, 256  ;;  %183 = vbcast.lane.b32.xlu0 %v181_v23, 256  ;;  %v691_v33 = vpack.c.bf16 %v31_v29, %v30_v28  ;;  %v216_v36 = vrot.slane %v817_v18, %v848_v32  ;;  %v695_v37 = vpack.c.bf16 %v33_v35, %v32_v34  ;;  %v16_v42 = vld [vmem:[%s985_s0 + $0x28] sm:$0xff]  ;;  %v17_v44 = vld [vmem:[%s985_s0 + $0x30] sm:$0xff]  ;;  %v14_v45 = vld [vmem:[%s985_s0 + $0x18] sm:$0xff]  ;;  %v887_v12 = vsub.s32 6, %v785_v6 }
   0x9   :  { %678 = vmatpush3.bf16.msra.mxu0 %v675_v7  ;;  %712 = vmatpush3.bf16.msra.mxu1 %v675_v7  ;;  %v699_v40 = vpack.c.bf16 %v35_v39, %v34_v38  ;;  %v18_v46 = vld [vmem:[%s985_s0 + $0x38] sm:$0xff]  ;;  %v152_v55 = vrot.slane %v31_v29, %v809_v16  ;;  %v230_v14 = vrot.slane %v817_v18, %v884_v11 }
   0xa   :  { %680 = vmatprep.subr.bf16.mxu0 %v679_v10  ;;  %705 = vmatprep.subr.bf16.mxu1 %v679_v10  ;;  %v223_v15 = vrot.slane %v817_v18, %v887_v12 }
   0xc   :  { %197 = vbcast.lane.b32.xlu1 %v195_v25, 256  ;;  %211 = vbcast.lane.b32.xlu0 %v209_v30, 256 }
   0xd   :  { %682 = vmatpush3.bf16.msra.mxu0 %v679_v10  ;;  %713 = vmatpush3.bf16.msra.mxu1 %v679_v10  ;;  %v756_v10 = vmov 0  }
   0xe   :  { %684 = vmatprep.subr.bf16.mxu0 %v683_v19  ;;  %706 = vmatprep.subr.bf16.mxu1 %v683_v19 }
   0xf   :  { %721 = vset.pattern.permute.xlu0 %v756_v10  ;;  %720 = vset.pattern.permute.xlu1 %v756_v10 }
  0x10   :  { %204 = vbcast.lane.b32.xlu1 %v202_v31, 256 }
  0x11   :  { %686 = vmatpush3.bf16.msra.mxu0 %v683_v19  ;;  %714 = vmatpush3.bf16.msra.mxu1 %v683_v19 }
  0x12   :  { %688 = vmatprep.subr.bf16.mxu0 %v687_v27  ;;  %707 = vmatprep.subr.bf16.mxu1 %v687_v27 }
  0x14   :  { %218 = vbcast.lane.b32.xlu1 %v216_v36, 256 }
  0x15   :  { %690 = vmatpush3.bf16.msra.mxu0 %v687_v27  ;;  %715 = vmatpush3.bf16.msra.mxu1 %v687_v27 }
  0x16   :  { %692 = vmatprep.subr.bf16.mxu0 %v691_v33  ;;  %708 = vmatprep.subr.bf16.mxu1 %v691_v33 }
  0x19   :  { %694 = vmatpush3.bf16.msra.mxu0 %v691_v33  ;;  %716 = vmatpush3.bf16.msra.mxu1 %v691_v33 }
  0x1a   :  { %696 = vmatprep.subr.bf16.mxu0 %v695_v37  ;;  %709 = vmatprep.subr.bf16.mxu1 %v695_v37 }
  0x1d   :  { %698 = vmatpush3.bf16.msra.mxu0 %v695_v37  ;;  %717 = vmatpush3.bf16.msra.mxu1 %v695_v37 }
  0x1e   :  { %700 = vmatprep.subr.bf16.mxu0 %v699_v40  ;;  %710 = vmatprep.subr.bf16.mxu1 %v699_v40 }
  0x21   :  { %702 = vmatpush3.bf16.msra.mxu0 %v699_v40  ;;  %718 = vmatpush3.bf16.msra.mxu1 %v699_v40 }
  0x24   :  { %660 = vmatmul.mubr.f32.vlgmr.msra.gmra.mrb[0].mxu0 %v12_v41  ;;  %666 = vmatmul.mubr.f32.vlgmr.msra.gmra.mrb[0].mxu1 %v16_v42 }
  0x25   :  { %662 = vmatprep.mubr.f32.mxu0 %v13_v43  ;;  %668 = vmatprep.mubr.f32.mxu1 %v17_v44 }
  0x28   :  { %663 = vmatmul.mubr.f32.gmra.mrb[2].mxu0 %v14_v45  ;;  %669 = vmatmul.mubr.f32.gmra.mrb[2].mxu1 %v18_v46 }
  0x7a   :  { %v191_v19 = vpop.permute.xlu1 %190  ;;  %v184_v21 = vpop.permute.xlu0 %183 }
  0x7e   :  { %v198_v20 = vpop.permute.xlu1 %197  ;;  %v212_v23 = vpop.permute.xlu0 %211 }
  0x82   :  { %v205_v22 = vpop.permute.xlu1 %204 }
  0x86   :  { %v219_v25 = vpop.permute.xlu1 %218 }
  0xf7   :  { %v661_v47 = vpop.f32.mrb[0].mxu0  ;;  %v667_v48 = vpop.f32.mrb[0].mxu1 }
  0xf8   :  { %722 = vtanh.f32 %v661_v47  ;;  %v102_v49 = vpop.f32.mrb[1].mxu0  ;;  %v122_v50 = vpop.f32.mrb[1].mxu1  ;;  %v283_v47 = vand.u32 127, %v149_v0 }
  0xf9   :  { %724 = vtanh.f32 %v667_v48 }
  0xfa   :  { %726 = vtanh.f32 %v102_v49 }
  0xfb   :  { %728 = vtanh.f32 %v122_v50  ;;  %v664_v51 = vpop.f32.mrb[2].mxu0  ;;  %v670_v52 = vpop.f32.mrb[2].mxu1  ;;  %v910_v50 = vsub.s32 %v283_v47, %v785_v6 }
  0xfc   :  { %730 = vtanh.f32 %v664_v51  ;;  %v112_v53 = vpop.f32.mrb[3].mxu0  ;;  %v132_v54 = vpop.f32.mrb[3].mxu1 }
  0xfd   :  { %732 = vtanh.f32 %v112_v53 }
  0xfe   :  { %734 = vtanh.f32 %v670_v52 }
  0xff   :  { %736 = vtanh.f32 %v132_v54 }
 0x102   :  { %v723_v56 = vpop.eup %722 }
 0x103   :  { %v725_v57 = vpop.eup %724  ;;  %v154_v58 = vmul.f32 %v723_v56, %v152_v55 }
 0x104   :  { %v727_v59 = vpop.eup %726  ;;  %v158_v60 = vmul.f32 %v725_v57, %v152_v55 }
 0x105   :  { %v729_v61 = vpop.eup %728  ;;  %163 = vadd.xlane.f32.xlu0 %v154_v58  ;;  %v153_v62 = vmul.f32 %v727_v59, %v152_v55 }
 0x106   :  { %v731_v63 = vpop.eup %730  ;;  %171 = vadd.xlane.f32.xlu1 %v158_v60  ;;  %v157_v1 = vmul.f32 %v729_v61, %v152_v55 }
 0x107   :  { %v733_v2 = vpop.eup %732  ;;  %v156_v3 = vmul.f32 %v731_v63, %v152_v55 }
 0x108   :  { %v735_v4 = vpop.eup %734  ;;  %v155_v5 = vmul.f32 %v733_v2, %v152_v55 }
 0x109   :  { %v737_v7 = vpop.eup %736  ;;  %161 = vadd.xlane.f32.xlu0 %v153_v62  ;;  %v160_v8 = vmul.f32 %v735_v4, %v152_v55 }
 0x10a   :  { %167 = vadd.xlane.f32.xlu1 %v156_v3  ;;  %v159_v9 = vmul.f32 %v737_v7, %v152_v55 }
 0x10d   :  { %169 = vadd.xlane.f32.xlu0 %v157_v1 }
 0x10e   :  { %175 = vadd.xlane.f32.xlu1 %v160_v8 }
 0x111   :  { %173 = vadd.xlane.f32.xlu0 %v159_v9 }
 0x112   :  { %165 = vadd.xlane.f32.xlu1 %v155_v5 }
 0x123   :  { %232 = vbcast.lane.b32.xlu1 %v230_v14, 256 }
 0x127   :  { %225 = vbcast.lane.b32.xlu0 %v223_v15, 256 }
 0x192   :  { %v164_v27 = vpop.xlane.xlu0 %163 }
 0x193   :  { %v172_v28 = vpop.xlane.xlu1 %171  ;;  %v893_v29 = vadd.f32 %v191_v19, %v164_v27 }
 0x194   :  { %v895_v30 = vadd.f32 %v219_v25, %v172_v28 }
 0x195   :  { %262 = vperm.xlu1 %720, %v893_v29  }
 0x196   :  { %274 = vperm.xlu0 %721, %v895_v30   ;;  %v162_v31 = vpop.xlane.xlu0 %161 }
 0x197   :  { %v242_v18 = vadd.f32 %v184_v21, %v162_v31  ;;  %v168_v33 = vpop.xlane.xlu1 %167 }
 0x198   :  { %v245_v37 = vadd.f32 %v205_v22, %v168_v33 }
 0x19a   :  { %259 = vperm.xlu0 %721, %v242_v18   ;;  %v170_v34 = vpop.xlane.xlu0 %169 }
 0x19b   :  { %v899_v35 = vadd.f32 %v212_v23, %v170_v34  ;;  %v176_v36 = vpop.xlane.xlu1 %175 }
 0x19d   :  { %271 = vperm.xlu1 %720, %v899_v35  }
 0x19e   :  { %268 = vperm.xlu0 %721, %v245_v37   ;;  %v174_v38 = vpop.xlane.xlu0 %173 }
 0x19f   :  { %v166_v39 = vpop.xlane.xlu1 %165 }
 0x1a0   :  { %v244_v40 = vadd.f32 %v198_v20, %v166_v39 }
 0x1a2   :  { %265 = vperm.xlu1 %720, %v244_v40   ;;  %v226_v41 = vpop.permute.xlu0 %225 }
 0x1a3   :  { %v902_v42 = vadd.f32 %v226_v41, %v174_v38  ;;  %v233_v43 = vpop.permute.xlu1 %232 }
 0x1a4   :  { %v904_v44 = vadd.f32 %v233_v43, %v176_v36 }
 0x1a6   :  { %277 = vperm.xlu1 %720, %v902_v42   ;;  %280 = vperm.xlu0 %721, %v904_v44  }
 0x214   :  { %v263_v46 = vpop.permute.xlu1 %262 }
 0x215   :  { %v275_v45 = vpop.permute.xlu0 %274  ;;  %v291_v53 = vrot.slane %v263_v46, %v910_v50 }
 0x216   :  { %v307_v58 = vrot.slane %v275_v45, %v910_v50 }
 0x219   :  { %v260_v48 = vpop.permute.xlu0 %259 }
 0x21a   :  { %v287_v51 = vrot.slane %v260_v48, %v910_v50 }
 0x21c   :  { %v272_v49 = vpop.permute.xlu1 %271  ;;  %v317_v56 = vsel %vm316_vm0, %v291_v53, %v287_v51 }
 0x21d   :  { %v269_v52 = vpop.permute.xlu0 %268  ;;  %v303_v57 = vrot.slane %v272_v49, %v910_v50 }
 0x21e   :  { %v299_v0 = vrot.slane %v269_v52, %v910_v50 }
 0x221   :  { %v266_v54 = vpop.permute.xlu1 %265 }
 0x222   :  { %v295_v55 = vrot.slane %v266_v54, %v910_v50 }
 0x224   :  { %v319_v6 = vsel %vm318_vm1, %v295_v55, %v317_v56 }
 0x225   :  { %v321_v59 = vsel %vm320_vm2, %v299_v0, %v319_v6  ;;  %v281_v60 = vpop.permute.xlu0 %280  ;;  %v278_v61 = vpop.permute.xlu1 %277 }
 0x226   :  { %v315_v62 = vrot.slane %v281_v60, %v910_v50  ;;  %v311_v63 = vrot.slane %v278_v61, %v910_v50  ;;  %v323_v1 = vsel %vm322_vm3, %v303_v57, %v321_v59 }
 0x227   :  { %v325_v2 = vsel %vm324_vm4, %v307_v58, %v323_v1 }
 0x228   :  { %v327_v3 = vsel %vm326_vm5, %v311_v63, %v325_v2 }
 0x229   :  { %v329_v4 = vsel %vm328_vm6, %v315_v62, %v327_v3 }
 0x22a   :  { %v332_v5 = vsel %vm331_vm7, %v329_v4, -inf }
 0x22b   :  { %333 = vmax.xlane.f32.xlu1 %v332_v5 }
 0x2b8   :  { %v334_v7 = vpop.xlane.xlu1 %333 }
 0x2b9   :  { %v339_v8 = vrot.slane %v334_v7, %v809_v16  ;;  %v343_v9 = vrot.slane %v334_v7, %v800_v13  ;;  %v347_v10 = vrot.slane %v334_v7, %v812_v17  ;;  %v351_v20 = vrot.slane %v334_v7, %v835_v26 }
 0x2ba   :  { %v355_v23 = vrot.slane %v334_v7, %v830_v24  ;;  %v359_v28 = vrot.slane %v334_v7, %v848_v32 }
 0x2bb   :  { %v376_v14 = vsub.f32 %v242_v18, %v339_v8  ;;  %v377_v15 = vsub.f32 %v893_v29, %v343_v9  ;;  %v378_v21 = vsub.f32 %v244_v40, %v347_v10  ;;  %v379_v25 = vsub.f32 %v245_v37, %v351_v20 }
 0x2bc   :  { %v380_v31 = vsub.f32 %v899_v35, %v355_v23  ;;  %v363_v29 = vrot.slane %v334_v7, %v887_v12  ;;  %v381_v34 = vsub.f32 %v895_v30, %v359_v28  ;;  %v367_v37 = vrot.slane %v334_v7, %v884_v11 }
 0x2bd   :  { %v384_v19 = vmul.f32 1.442695, %v376_v14  ;;  %v386_v22 = vmul.f32 1.442695, %v377_v15  ;;  %v388_v27 = vmul.f32 1.442695, %v378_v21 }
 0x2be   :  { %v390_v33 = vmul.f32 1.442695, %v379_v25  ;;  %v392_v36 = vmul.f32 1.442695, %v380_v31  ;;  %v382_v39 = vsub.f32 %v902_v42, %v363_v29  ;;  %v394_v40 = vmul.f32 1.442695, %v381_v34 }
 0x2bf   :  { %738 = vpow2.f32 %v384_v19  ;;  %v383_v35 = vsub.f32 %v904_v44, %v367_v37 }
 0x2c0   :  { %740 = vpow2.f32 %v386_v22  ;;  %v396_v43 = vmul.f32 1.442695, %v382_v39 }
 0x2c1   :  { %742 = vpow2.f32 %v388_v27  ;;  %v398_v30 = vmul.f32 1.442695, %v383_v35 }
 0x2c2   :  { %744 = vpow2.f32 %v390_v33 }
 0x2c3   :  { %746 = vpow2.f32 %v392_v36 }
 0x2c4   :  { %748 = vpow2.f32 %v394_v40 }
 0x2c5   :  { %750 = vpow2.f32 %v396_v43 }
 0x2c6   :  { %752 = vpow2.f32 %v398_v30 }
 0x2c9   :  { %v739_v18 = vpop.eup %738 }
 0x2ca   :  { %409 = vperm.xlu0 %721, %v739_v18   ;;  %v741_v38 = vpop.eup %740 }
 0x2cb   :  { %v743_v41 = vpop.eup %742 }
 0x2cc   :  { %v745_v45 = vpop.eup %744 }
 0x2cd   :  { %v747_v46 = vpop.eup %746 }
 0x2ce   :  { %412 = vperm.xlu0 %721, %v741_v38   ;;  %v749_v47 = vpop.eup %748 }
 0x2cf   :  { %v751_v48 = vpop.eup %750 }
 0x2d0   :  { %v753_v42 = vpop.eup %752 }
 0x2d2   :  { %415 = vperm.xlu0 %721, %v743_v41  }
 0x2d6   :  { %418 = vperm.xlu0 %721, %v745_v45  }
 0x2da   :  { %421 = vperm.xlu0 %721, %v747_v46  }
 0x2de   :  { %424 = vperm.xlu0 %721, %v749_v47  }
 0x2e2   :  { %427 = vperm.xlu0 %721, %v751_v48  }
 0x2e6   :  { %430 = vperm.xlu0 %721, %v753_v42  }
 0x349   :  { %v410_v49 = vpop.permute.xlu0 %409 }
 0x34a   :  { %v435_v0 = vrot.slane %v410_v49, %v910_v50 }
 0x34d   :  { %v413_v51 = vpop.permute.xlu0 %412 }
 0x34e   :  { %v439_v55 = vrot.slane %v413_v51, %v910_v50 }
 0x350   :  { %v464_v59 = vsel %vm316_vm0, %v439_v55, %v435_v0 }
 0x351   :  { %v416_v52 = vpop.permute.xlu0 %415 }
 0x352   :  { %v443_v56 = vrot.slane %v416_v52, %v910_v50 }
 0x354   :  { %v465_v61 = vsel %vm318_vm1, %v443_v56, %v464_v59 }
 0x355   :  { %v419_v53 = vpop.permute.xlu0 %418 }
 0x356   :  { %v447_v57 = vrot.slane %v419_v53, %v910_v50 }
 0x358   :  { %v466_v63 = vsel %vm320_vm2, %v447_v57, %v465_v61 }
 0x359   :  { %v422_v44 = vpop.permute.xlu0 %421 }
 0x35a   :  { %v451_v6 = vrot.slane %v422_v44, %v910_v50 }
 0x35c   :  { %v467_v1 = vsel %vm322_vm3, %v451_v6, %v466_v63 }
 0x35d   :  { %v425_v54 = vpop.permute.xlu0 %424 }
 0x35e   :  { %v455_v60 = vrot.slane %v425_v54, %v910_v50 }
 0x360   :  { %v468_v3 = vsel %vm324_vm4, %v455_v60, %v467_v1 }
 0x361   :  { %v428_v58 = vpop.permute.xlu0 %427 }
 0x362   :  { %v459_v62 = vrot.slane %v428_v58, %v910_v50 }
 0x364   :  { %v469_v5 = vsel %vm326_vm5, %v459_v62, %v468_v3 }
 0x365   :  { %v431_v2 = vpop.permute.xlu0 %430 }
 0x366   :  { %v463_v4 = vrot.slane %v431_v2, %v910_v50 }
 0x368   :  { %v470_v7 = vsel %vm328_vm6, %v463_v4, %v469_v5 }
 0x369   :  { %v472_v8 = vsel %vm331_vm7, %v470_v7, 0.0 }
 0x36a   :  { %473 = vadd.xlane.f32.xlu0 %v472_v8 }
 0x3f7   :  { %v474_v9 = vpop.xlane.xlu0 %473 }
 0x3f8   :  { %754 = vrcp.f32 %v474_v9 }
 0x402   :  { %v755_v10 = vpop.eup %754 }
 0x403   :  { %v496_v14 = vrot.slane %v755_v10, %v830_v24  ;;  %v480_v15 = vrot.slane %v755_v10, %v809_v16  ;;  %v484_v21 = vrot.slane %v755_v10, %v800_v13  ;;  %v488_v23 = vrot.slane %v755_v10, %v812_v17 }
 0x404   :  { %v492_v27 = vrot.slane %v755_v10, %v835_v26  ;;  %v500_v31 = vrot.slane %v755_v10, %v848_v32  ;;  %v504_v16 = vrot.slane %v755_v10, %v887_v12  ;;  %v508_v13 = vrot.slane %v755_v10, %v884_v11 }
 0x405   :  { %v521_v19 = vmul.f32 %v747_v46, %v496_v14  ;;  %v517_v20 = vmul.f32 %v739_v18, %v480_v15  ;;  %v518_v22 = vmul.f32 %v741_v38, %v484_v21  ;;  %v519_v25 = vmul.f32 %v743_v41, %v488_v23 }
 0x406   :  { %v520_v28 = vmul.f32 %v745_v45, %v492_v27  ;;  %v522_v24 = vmul.f32 %v749_v47, %v500_v31  ;;  %v523_v33 = vmul.f32 %v751_v48, %v504_v16  ;;  %v524_v18 = vmul.f32 %v753_v42, %v508_v13 }
 0x407   :  { %546 = vperm.xlu0 %721, %v521_v19   ;;  %534 = vperm.xlu1 %720, %v517_v20  }
 0x40b   :  { %537 = vperm.xlu1 %720, %v518_v22  }
 0x40f   :  { %540 = vperm.xlu1 %720, %v519_v25  }
 0x413   :  { %543 = vperm.xlu1 %720, %v520_v28  }
 0x417   :  { %549 = vperm.xlu1 %720, %v522_v24  }
 0x41b   :  { %552 = vperm.xlu1 %720, %v523_v33  }
 0x41f   :  { %555 = vperm.xlu1 %720, %v524_v18  }
 0x486   :  { %v535_v17 = vpop.permute.xlu1 %534  ;;  %v547_v39 = vpop.permute.xlu0 %546 }
 0x487   :  { %v560_v37 = vrot.slane %v535_v17, %v910_v50  ;;  %v576_v45 = vrot.slane %v547_v39, %v910_v50 }
 0x48a   :  { %v538_v29 = vpop.permute.xlu1 %537 }
 0x48b   :  { %v564_v26 = vrot.slane %v538_v29, %v910_v50 }
 0x48d   :  { %v589_v40 = vsel %vm316_vm0, %v564_v26, %v560_v37 }
 0x48e   :  { %v541_v34 = vpop.permute.xlu1 %540 }
 0x48f   :  { %v568_v38 = vrot.slane %v541_v34, %v910_v50 }
 0x491   :  { %v590_v11 = vsel %vm318_vm1, %v568_v38, %v589_v40 }
 0x492   :  { %v544_v36 = vpop.permute.xlu1 %543 }
 0x493   :  { %v572_v12 = vrot.slane %v544_v36, %v910_v50 }
 0x495   :  { %v591_v35 = vsel %vm320_vm2, %v572_v12, %v590_v11 }
 0x496   :  { %v550_v32 = vpop.permute.xlu1 %549  ;;  %v592_v46 = vsel %vm322_vm3, %v576_v45, %v591_v35 }
 0x497   :  { %v580_v43 = vrot.slane %v550_v32, %v910_v50 }
 0x499   :  { %v593_v48 = vsel %vm324_vm4, %v580_v43, %v592_v46 }
 0x49a   :  { %v553_v41 = vpop.permute.xlu1 %552 }
 0x49b   :  { %v584_v30 = vrot.slane %v553_v41, %v910_v50 }
 0x49d   :  { %v594_v49 = vsel %vm326_vm5, %v584_v30, %v593_v48 }
 0x49e   :  { %v556_v47 = vpop.permute.xlu1 %555 }
 0x49f   :  { %v588_v42 = vrot.slane %v556_v47, %v910_v50 }
 0x4a1   :  { %v595_v51 = vsel %vm328_vm6, %v588_v42, %v594_v49 }
 0x4a2   :  { %v597_v52 = vsel %vm331_vm7, %v595_v51, 0.0 }
 0x4a3   :  { %598 = vst [vmem:[%s986_s2] sm:$0xff] %v597_v52 }

</bundles_post_ra>
